<compile_context>
chip_gen: v5e
topology: v5e:2x2
jax: 0.10.0
libtpu: 0.0.40
codegen_flags: <defaults>
</compile_context>

<pallas_src>
import functools

import jax
import jax.numpy as jnp
from jax.experimental import pallas as pl
from jax.experimental.pallas import tpu as pltpu


# ----------------------------------------------------------------------------
# Kernel 1: edge encoder for all layers (hoisted out of the layer loop)
#   eemb[l] = edge_attr @ We[l] + be[l]
# ----------------------------------------------------------------------------
def _edge_emb_kernel(eattr_ref, we_ref, be_ref, out_ref):
    e = jnp.dot(eattr_ref[...].astype(jnp.bfloat16), we_ref[0],
                preferred_element_type=jnp.float32) + be_ref[0]
    out_ref[0] = e


# ----------------------------------------------------------------------------
# Kernel 2: fused GNN forward. Grid = (num_layer,), "arbitrary".
#   Per grid step l:
#     h_in  = h + vn[batch]                         (masked VPU broadcast)
#     msg   = relu(h_in[src] + eemb_l)              (bf16 one-hot gather matmul)
#     aggr  = scatter_add(msg, dst)                 (bf16 one-hot scatter matmul)
#     z     = (1 + eps_l) * h_in + aggr
#     y     = BN_D( relu(BN_2D(z @ W1 + b1)) @ W2 + b2 )   (BN folded -> scale/shift)
#     h     = relu(y) if l != L-1 else y            (h stays resident in out block)
#     if l != L-1:
#       vn  = relu(BN_D( relu(BN_2D((pool(h_in)+vn) @ V1 + vb1)) @ V2 + vb2 ))
# ----------------------------------------------------------------------------
def _gnn_fused_kernel(num_layer, num_graphs,
                      x_ref, batch_ref, src_oh_ref, dstT_oh_ref, eemb_ref, eps_ref,
                      w1_ref, b1_ref, s1_ref, t1_ref,
                      w2_ref, b2_ref, s2_ref, t2_ref,
                      v1_ref, vb1_ref, vs1_ref, vt1_ref,
                      v2_ref, vb2_ref, vs2_ref, vt2_ref,
                      h_ref, vn_scr):
    l = pl.program_id(0)

    # layer 0 init: h <- x (node_encoder=None, perturb=None), vn <- 0
    @pl.when(l == 0)
    def _():
        h_ref[...] = x_ref[...]
        vn_scr[...] = jnp.zeros_like(vn_scr)

    h = h_ref[...]                      # [N, D] f32, resident across layers
    vn = vn_scr[...]                    # [G, D] f32, resident across layers
    batch = batch_ref[...]              # [N, 1] int32

    # per-graph {0,1} masks (VPU); reused for vn broadcast and global_add_pool
    masks = [(batch == g).astype(jnp.float32) for g in range(num_graphs)]

    # h_in = h + virtualnode_embedding[batch]
    vn_bcast = jnp.zeros_like(h)
    for g in range(num_graphs):
        vn_bcast = vn_bcast + masks[g] * vn[g:g + 1, :]
    h_in = h + vn_bcast

    # GIN message passing (dense bf16 one-hot gather/scatter, f32 accumulation)
    h_in_bf = h_in.astype(jnp.bfloat16)
    x_src = jnp.dot(src_oh_ref[...], h_in_bf, preferred_element_type=jnp.float32)
    msg = jnp.maximum(x_src + eemb_ref[0], 0.0)
    aggr = jnp.dot(dstT_oh_ref[...], msg.astype(jnp.bfloat16),
                   preferred_element_type=jnp.float32)

    z = (1.0 + eps_ref[0]) * h_in + aggr          # eps_ref[0]: [1, D] row of eps_l

    # GIN MLP + per-layer BatchNorm (folded to scale/shift)
    m = jnp.dot(z.astype(jnp.bfloat16), w1_ref[0],
                preferred_element_type=jnp.float32) + b1_ref[0]
    m = jnp.maximum(m * s1_ref[0] + t1_ref[0], 0.0)
    y = jnp.dot(m.astype(jnp.bfloat16), w2_ref[0],
                preferred_element_type=jnp.float32) + b2_ref[0]
    y = y * s2_ref[0] + t2_ref[0]

    @pl.when(l == num_layer - 1)
    def _():
        h_ref[...] = y                            # last layer: no ReLU (eval dropout = id)

    @pl.when(l != num_layer - 1)
    def _():
        h_ref[...] = jnp.maximum(y, 0.0)

        # fused virtual-node update (feeds the next layer's broadcast)
        pooled_rows = [jnp.sum(masks[g] * h_in, axis=0, keepdims=True)
                       for g in range(num_graphs)]
        pooled = jnp.concatenate(pooled_rows, axis=0) + vn            # [G, D]
        pm = jnp.dot(pooled.astype(jnp.bfloat16), v1_ref[0],
                     preferred_element_type=jnp.float32) + vb1_ref[0]
        pm = jnp.maximum(pm * vs1_ref[0] + vt1_ref[0], 0.0)
        pv = jnp.dot(pm.astype(jnp.bfloat16), v2_ref[0],
                     preferred_element_type=jnp.float32) + vb2_ref[0]
        vn_scr[...] = jnp.maximum(pv * vs2_ref[0] + vt2_ref[0], 0.0)


# ----------------------------------------------------------------------------
# Parameter construction (deterministic, synthetic), stacked on a leading L axis
# ----------------------------------------------------------------------------
def _fold_bn(gamma, beta, bn_eps=1e-5):
    # eval-mode BatchNorm1d with running_mean=0, running_var=1 folded to scale/shift
    scale = gamma / jnp.sqrt(1.0 + bn_eps)
    return scale[None, :].astype(jnp.float32), beta[None, :].astype(jnp.float32)


def init_params(key, num_layer, emb_dim, edge_dim):
    L, D, D2 = num_layer, emb_dim, 2 * emb_dim
    keys = iter(jax.random.split(key, L * 10 + (L - 1) * 10))

    def nrm(shape, s=0.1):
        return (s * jax.random.normal(next(keys), shape)).astype(jnp.float32)

    conv = {k: [] for k in ("we", "be", "w1", "b1", "s1", "t1", "w2", "b2", "s2", "t2")}
    for _ in range(L):
        conv["we"].append(nrm((edge_dim, D)))
        conv["be"].append(nrm((1, D)))
        conv["w1"].append(nrm((D, D2)))
        conv["b1"].append(nrm((1, D2)))
        s1, t1 = _fold_bn(1.0 + nrm((D2,)), nrm((D2,)))    # mlp-internal BN(2D)
        conv["s1"].append(s1)
        conv["t1"].append(t1)
        conv["w2"].append(nrm((D2, D)))
        conv["b2"].append(nrm((1, D)))
        s2, t2 = _fold_bn(1.0 + nrm((D,)), nrm((D,)))      # per-layer BN(D)
        conv["s2"].append(s2)
        conv["t2"].append(t2)

    vnp = {k: [] for k in ("v1", "vb1", "vs1", "vt1", "v2", "vb2", "vs2", "vt2")}
    for _ in range(L - 1):
        vnp["v1"].append(nrm((D, D2)))
        vnp["vb1"].append(nrm((1, D2)))
        vs1, vt1 = _fold_bn(1.0 + nrm((D2,)), nrm((D2,)))
        vnp["vs1"].append(vs1)
        vnp["vt1"].append(vt1)
        vnp["v2"].append(nrm((D2, D)))
        vnp["vb2"].append(nrm((1, D)))
        vs2, vt2 = _fold_bn(1.0 + nrm((D,)), nrm((D,)))
        vnp["vs2"].append(vs2)
        vnp["vt2"].append(vt2)
    # pad vn-MLP params to L entries; the last layer's block is fetched but unused
    for k in vnp:
        vnp[k].append(jnp.zeros_like(vnp[k][0]))

    mxu_bf16 = {"we", "w1", "w2", "v1", "v2"}
    params = {}
    for k, v in {**conv, **vnp}.items():
        stacked = jnp.stack(v)                                  # [L, ...]
        params[k] = stacked.astype(jnp.bfloat16) if k in mxu_bf16 else stacked
    params["eps"] = jnp.zeros((L, 1, D), jnp.float32)           # GINConv eps init 0
    return params


# ----------------------------------------------------------------------------
# Forward pass (glue in plain JAX, compute in the two Pallas kernels)
# ----------------------------------------------------------------------------
def gnn_node_virtualnode_forward(x, edge_index, edge_attr, batch, params,
                                 num_layer, num_graphs):
    N, D = x.shape
    E, edge_dim = edge_attr.shape
    D2 = 2 * D
    L, G = num_layer, num_graphs

    # glue: bf16 0/1 gather/scatter matrices (exact) and int32 graph ids
    src_oh = jax.nn.one_hot(edge_index[0], N, dtype=jnp.bfloat16)        # [E, N]
    dstT_oh = jax.nn.one_hot(edge_index[1], N, dtype=jnp.bfloat16).T     # [N, E]
    batch_ids = batch.astype(jnp.int32).reshape(N, 1)                    # [N, 1]

    # Kernel 1: edge embeddings for all layers (hoisted K=edge_dim matmul).
    eemb = pl.pallas_call(
        _edge_emb_kernel,
        out_shape=jax.ShapeDtypeStruct((L, E, D), jnp.float32),
        grid_spec=pltpu.PrefetchScalarGridSpec(
            num_scalar_prefetch=0,
            grid=(L,),
            in_specs=[
                pl.BlockSpec((E, edge_dim), lambda l: (0, 0)),
                pl.BlockSpec((1, edge_dim, D), lambda l: (l, 0, 0)),
                pl.BlockSpec((1, 1, D), lambda l: (l, 0, 0)),
            ],
            out_specs=pl.BlockSpec((1, E, D), lambda l: (l, 0, 0)),
        ),
        compiler_params=pltpu.CompilerParams(
            dimension_semantics=("parallel",),
            vmem_limit_bytes=32 * 1024 * 1024),
    )(edge_attr, params["we"], params["be"])

    # Kernel 2: fused GIN layers + virtual-node updates; layer loop is the grid.
    lw = lambda l: (l, 0, 0)       # layer-indexed (streamed) blocks
    cw2 = lambda l: (0, 0)         # layer-invariant blocks (DMA'd once, stay resident)
    kernel = functools.partial(_gnn_fused_kernel, L, G)
    h_out = pl.pallas_call(
        kernel,
        out_shape=jax.ShapeDtypeStruct((N, D), jnp.float32),
        grid_spec=pltpu.PrefetchScalarGridSpec(
            num_scalar_prefetch=0,
            grid=(L,),
            in_specs=[
                pl.BlockSpec((N, D), cw2),         # x
                pl.BlockSpec((N, 1), cw2),         # batch ids (int32)
                pl.BlockSpec((E, N), cw2),         # src one-hot (bf16)
                pl.BlockSpec((N, E), cw2),         # dst^T one-hot (bf16)
                pl.BlockSpec((1, E, D), lw),       # edge embeddings (per layer)
                pl.BlockSpec((1, 1, D), lw),       # eps row (per layer)
                pl.BlockSpec((1, D, D2), lw),      # W1
                pl.BlockSpec((1, 1, D2), lw),      # b1
                pl.BlockSpec((1, 1, D2), lw),      # s1
                pl.BlockSpec((1, 1, D2), lw),      # t1
                pl.BlockSpec((1, D2, D), lw),      # W2
                pl.BlockSpec((1, 1, D), lw),       # b2
                pl.BlockSpec((1, 1, D), lw),       # s2
                pl.BlockSpec((1, 1, D), lw),       # t2
                pl.BlockSpec((1, D, D2), lw),      # V1
                pl.BlockSpec((1, 1, D2), lw),      # vb1
                pl.BlockSpec((1, 1, D2), lw),      # vs1
                pl.BlockSpec((1, 1, D2), lw),      # vt1
                pl.BlockSpec((1, D2, D), lw),      # V2
                pl.BlockSpec((1, 1, D), lw),       # vb2
                pl.BlockSpec((1, 1, D), lw),       # vs2
                pl.BlockSpec((1, 1, D), lw),       # vt2
            ],
            out_specs=pl.BlockSpec((N, D), cw2),   # h: VMEM-resident across layers
            scratch_shapes=[pltpu.VMEM((G, D), jnp.float32)],   # virtual-node state
        ),
        compiler_params=pltpu.CompilerParams(
            dimension_semantics=("arbitrary",),
            vmem_limit_bytes=32 * 1024 * 1024),
    )(x, batch_ids, src_oh, dstT_oh, eemb, params["eps"],
      params["w1"], params["b1"], params["s1"], params["t1"],
      params["w2"], params["b2"], params["s2"], params["t2"],
      params["v1"], params["vb1"], params["vs1"], params["vt1"],
      params["v2"], params["vb2"], params["vs2"], params["vt2"])
    return h_out   # JK == 'last'


if __name__ == "__main__":
    N, E, G = 16, 48, 2
    emb_dim, edge_dim, num_layer = 128, 8, 3

    key = jax.random.PRNGKey(0)
    kx, ke, ka, kp = jax.random.split(key, 4)

    x = jax.random.normal(kx, (N, emb_dim), jnp.float32)

    # edges stay within each graph (nodes 0..7 -> graph 0, 8..15 -> graph 1)
    ks = jax.random.split(ke, 4)
    src0 = jax.random.randint(ks[0], (E // 2,), 0, N // 2)
    dst0 = jax.random.randint(ks[1], (E // 2,), 0, N // 2)
    src1 = jax.random.randint(ks[2], (E // 2,), N // 2, N)
    dst1 = jax.random.randint(ks[3], (E // 2,), N // 2, N)
    edge_index = jnp.stack([jnp.concatenate([src0, src1]),
                            jnp.concatenate([dst0, dst1])]).astype(jnp.int32)

    edge_attr = jax.random.normal(ka, (E, edge_dim), jnp.float32)
    batch = jnp.concatenate([jnp.zeros(N // 2, jnp.int32),
                             jnp.ones(N // 2, jnp.int32)])

    params = init_params(kp, num_layer, emb_dim, edge_dim)

    out = gnn_node_virtualnode_forward(x, edge_index, edge_attr, batch, params,
                                       num_layer, G)
    jax.block_until_ready(out)
    assert out.shape == (N, emb_dim) and out.dtype == jnp.float32
    print("KERNEL_OK")
</pallas_src>

<mosaic_0001>
module attributes {stable_mosaic.version = 11 : i64} {
  func.func @_edge_emb_kernel(%arg0: i32, %arg1: memref<48x8xf32, #tpu.memory_space<vmem>>, %arg2: memref<1x8x128xbf16, #tpu.memory_space<vmem>>, %arg3: memref<1x1x128xf32, #tpu.memory_space<vmem>>, %arg4: memref<1x48x128xf32, #tpu.memory_space<vmem>>) attributes {dimension_semantics = [#tpu.dimension_semantics<parallel>], iteration_bounds = array<i64: 3>, scalar_prefetch = 0 : i64, scratch_operands = 0 : i64, tpu.core_type = #tpu.core_type<tc>, window_params = [{pipeline_mode = #tpu.pipeline_mode<synchronous>, transform_indices = @transform_0, window_bounds = array<i64: 48, 8>}, {transform_indices = @transform_1, window_bounds = array<i64: 1, 8, 128>}, {transform_indices = @transform_2, window_bounds = array<i64: 1, 1, 128>}, {transform_indices = @transform_3, window_bounds = array<i64: 1, 48, 128>}]} {
    %c0 = arith.constant 0 : index
    %c0_0 = arith.constant 0 : index
    %0 = vector.load %arg1[%c0, %c0_0] : memref<48x8xf32, #tpu.memory_space<vmem>>, vector<48x8xf32>
    %1 = arith.truncf %0 : vector<48x8xf32> to vector<48x8xbf16>
    %c0_1 = arith.constant 0 : index
    %c0_2 = arith.constant 0 : index
    %c0_3 = arith.constant 0 : index
    %2 = vector.load %arg2[%c0_1, %c0_2, %c0_3] : memref<1x8x128xbf16, #tpu.memory_space<vmem>>, vector<1x8x128xbf16>
    %3 = vector.shape_cast %2 : vector<1x8x128xbf16> to vector<8x128xbf16>
    %cst = arith.constant dense<0.000000e+00> : vector<48x128xf32>
    %4 = tpu.matmul %1, %3, %cst {dimension_numbers = #tpu.dot_dimension_numbers<[1], [0], [0], [1], [0, 0, 1, 1], [], []>} : vector<48x8xbf16>, vector<8x128xbf16>, vector<48x128xf32> -> vector<48x128xf32>
    %c0_4 = arith.constant 0 : index
    %c0_5 = arith.constant 0 : index
    %c0_6 = arith.constant 0 : index
    %5 = vector.load %arg3[%c0_4, %c0_5, %c0_6] : memref<1x1x128xf32, #tpu.memory_space<vmem>>, vector<1x1x128xf32>
    %6 = vector.shape_cast %5 : vector<1x1x128xf32> to vector<1x128xf32>
    %7 = vector.broadcast %6 : vector<1x128xf32> to vector<48x128xf32>
    %8 = arith.addf %4, %7 : vector<48x128xf32>
    %c0_7 = arith.constant 0 : index
    %c0_8 = arith.constant 0 : index
    %c0_9 = arith.constant 0 : index
    %9 = vector.load %arg4[%c0_7, %c0_8, %c0_9] : memref<1x48x128xf32, #tpu.memory_space<vmem>>, vector<1x48x128xf32>
    %10 = vector.shape_cast %9 : vector<1x48x128xf32> to vector<48x128xf32>
    %11 = vector.shape_cast %8 : vector<48x128xf32> to vector<1x48x128xf32>
    tpu.vector_store %arg4[%c0_7, %c0_8, %c0_9], %11 {strides = array<i32>} : memref<1x48x128xf32, #tpu.memory_space<vmem>>, vector<1x48x128xf32>,
    return
  }
  func.func @transform_0(%arg0: i32) -> (i32, i32) {
    %c0_i32 = arith.constant 0 : i32
    %c0_i32_0 = arith.constant 0 : i32
    %c0_i32_1 = arith.constant 0 : i32
    return %c0_i32, %c0_i32_0 : i32, i32
  }
  func.func @transform_1(%arg0: i32) -> (i32, i32, i32) {
    %c0_i32 = arith.constant 0 : i32
    %c0_i32_0 = arith.constant 0 : i32
    %c0_i32_1 = arith.constant 0 : i32
    return %arg0, %c0_i32, %c0_i32_0 : i32, i32, i32
  }
  func.func @transform_2(%arg0: i32) -> (i32, i32, i32) {
    %c0_i32 = arith.constant 0 : i32
    %c0_i32_0 = arith.constant 0 : i32
    %c0_i32_1 = arith.constant 0 : i32
    return %arg0, %c0_i32, %c0_i32_0 : i32, i32, i32
  }
  func.func @transform_3(%arg0: i32) -> (i32, i32, i32) {
    %c0_i32 = arith.constant 0 : i32
    %c0_i32_0 = arith.constant 0 : i32
    %c0_i32_1 = arith.constant 0 : i32
    return %arg0, %c0_i32, %c0_i32_0 : i32, i32, i32
  }
}

</mosaic_0001>

<bundles_post_ra>
// kernel: tpu_custom_call.1
= control target key start
LH: loop header
LB: loop body
LE: loop exit
PB: predicated region body
PF: predicated region fallthrough
CT: control target
= control target key end

     0   :  { %8 = vsyncpa [#allocation3], 0  ;;  %s575_s0 = inlined_call_operand.vmem [shape: f32[48,8], index: 0, kind: input, shape index: {}]   ;;  %s576_s1 = inlined_call_operand.vmem [shape: bf16[3,8,128], index: 1, kind: input, shape index: {}]   ;;  %s577_s2 = inlined_call_operand.vmem [shape: f32[3,1,128], index: 2, kind: input, shape index: {}]   ;;  %s578_s3 = inlined_call_operand.hbm [shape: f32[3,48,128], index: 3, kind: output, shape index: {}]  }
   0x1   :  { %10 = vsyncpa [#allocation3 + $0x1], 0  ;;  %s469_s12 = smov 0   ;;  %s471_s13 = smov 0  }
   0x2   :  { %s473_s14 = smov 0   ;;  %s475_s15 = smov 0  }
   0x3 LB: > { %s490_s16 = sadd.s32 4294967295, %s445_s15   ;;  %s326_s17 = sadd.s32 4294967294, %s445_s15   ;;  %s445_s15 = sphi %s475_s15, %s584_s15   ;;  %s441_s14 = sphi %s473_s14, %s583_s14   ;;  %s437_s13 = sphi %s471_s13, %s582_s13   ;;  %s433_s12 = sphi %s469_s12, %s581_s12  }
   0x4   : > { %s494_s18 = sadd.s32 1, %s445_s15   ;;  %s96_s19 = sadd.s32 1, %s441_s14 }
   0x5   : > { %s93_s20 = ssub.s32 %s445_s15, %s494_s18  ;;  %p106_p0 = scmp.ne.s32.totalorder %s441_s14, %s437_s13 }
   0x6   : > { %p94_p1 = scmp.eq.s32.totalorder %s93_s20, 0  ;;  %p107_p2 = scmp.eq.s32.totalorder %s490_s16, 2 }
   0x7   : > { %p112_p3 = scmp.ne.s32.totalorder %s437_s13, %s433_s12  ;;  %p113_p4 = scmp.eq.s32.totalorder %s326_s17, 2 }
   0x8   : > { %s505_s21 = scalar_select %p94_p1, %s441_s14, %s96_s19  }
   0x9   : > { %p507_p5 = por %p107_p2, %p106_p0  ;;  %p511_p6 = por %p113_p4, %p112_p3 }
   0xa   : > { %p329_p7 = scmp.ge.s32.totalorder %s445_s15, 1  ;;  %p147_p8 = scmp.lt.s32.totalorder %s445_s15, 4 }
   0xc   : > { %p148_p9 = pnand %p329_p7, %p147_p8 }
   0xd   : > { %p173_p10 = scmp.lt.s32.totalorder (!%p148_p9), %s490_s16, 2  ;;  %s170_s26 = sand.u32 (!%p148_p9), 1, %s437_s13  }
   0xe   : > { %151 = sbr.rel (%p148_p9) target bundleno = 175 (0xaf), region = 32 }
   0xf   : > { %s340_s29 = smul.u32 (!%p148_p9), 48, %s490_s16 }
  0x11   : > { %s251_s6 = scalar_lea.hbm (!%p148_p9), %s578_s3, %s340_s29 }
  0x12   : > { %s254_s7 = sshll.u32 (!%p148_p9), %s251_s6, 4  ;;  %s255_s7 = int_to_ptr.hbm [resolvable:$true] %s254_s7 }
  0x13   : > { %s174_s24 = scalar_select %p173_p10, %s490_s16, 2  ;;  %v181_v0 = vld [vmem:[%s575_s0] sm:$0xff]  ;;  %vm205_vm0 = vcmask 1043456   ;;  %v182_v1 = vld [vmem:[%s575_s0 + $0x8] sm:$0xff]  ;;  %v183_v2 = vld [vmem:[%s575_s0 + $0x10] sm:$0xff]  ;;  %vm195_vm1 = vcmask 64512  }
  0x14   : > { %v184_v3 = vld [vmem:[%s575_s0 + $0x18] sm:$0xff]  ;;  %v185_v4 = vld [vmem:[%s575_s0 + $0x20] sm:$0xff]  ;;  %v186_v5 = vld [vmem:[%s575_s0 + $0x28] sm:$0xff]  ;;  %v187_v8 = vpack.c.bf16 %v182_v1, %v181_v0  ;;  %s240_s16 = scalar_lea.sflag [#allocation3], %s170_s26  ;;  %s397_s8 = sshra.s32 %s255_s7, 4  ;;  %s398_s8 = int_to_ptr.hbm [resolvable:$true] %s397_s8 }
  0x15   : > { %s330_s27 = sshll.u32 %s174_s24, 2  ;;  %s179_s30 = scalar_lea.vmem %s577_s2, %s174_s24  ;;  %v188_v9 = vpack.c.bf16 %v184_v3, %v183_v2  ;;  %v189_v10 = vpack.c.bf16 %v186_v5, %v185_v4 }
  0x16   : > { %s176_s17 = scalar_lea.vmem %s576_s1, %s330_s27  ;;  %s339_s27 = smul.u32 48, %s170_s26  ;;  %v382_v11 = vld [vmem:[%s179_s30] ss:$0 sm:$0xff] }
  0x17   : > { %v190_v6 = vld [vmem:[%s176_s17] sm:$0xf]  ;;  %s399_s9 = scalar_lea.hbm %s398_s8, 48  ;;  %s403_s17 = scalar_lea.hbm %s578_s3, 144 }
  0x18   : > { %v207_v7 = vsel %vm205_vm0, %v190_v6, 0  ;;  %s172_s28 = scalar_lea.vmem [#allocation2], %s339_s27  ;;  %p400_p11 = scmp.ne.s32.totalorder %s398_s8, %s399_s9 }
  0x19   : > { %216 = vmatpush.bf16.msra.mxu0 %v207_v7  ;;  %337 = vmatpush.bf16.msra.mxu1 %v207_v7  ;;  %s252_s30 = sshll.u32 %s172_s28, 4  ;;  %p404_p0 = scmp.lt.s32.totalorder %s398_s8, %s578_s3  ;;  %s253_s30 = int_to_ptr.vmem [resolvable:$true] %s252_s30 }
  0x1a   : > { %338 = vmatpush.bf16.msra.mxu2 %v207_v7  ;;  %p401_p12 = pnand %p400_p11, %p507_p5  ;;  %p405_p1 = scmp.lt.s32.totalorder %s403_s17, %s399_s9 }
  0x1c   : > { %331 = vmatmul.msk.bf16.vlgmr.msra.gmra.mxu0 %vm195_vm1, %v187_v8  ;;  %332 = vmatmul.msk.bf16.vlgmr.msra.gmra.mxu1 %vm195_vm1, %v188_v9  ;;  %p402_p13 = pneg %p401_p12  ;;  %p406_p2 = por %p405_p1, %p404_p0 }
  0x1d   : > { %333 = vmatmul.msk.bf16.vlgmr.msra.gmra.mxu2 %vm195_vm1, %v189_v10 }
  0x1e   : > { %p407_p3 = pnand %p406_p2, %p402_p13 }
  0x99   : > { %v218_v12 = vpop.f32.mrf.mxu0  ;;  %v223_v13 = vpop.f32.mrf.mxu1 }
  0x9a   : > { %v219_v14 = vadd.f32 %v382_v11, %v218_v12  ;;  %v224_v15 = vadd.f32 %v382_v11, %v223_v13 }
  0x9c   : > { %233 = vst [vmem:[%s172_s28] sm:$0xff] %v219_v14 }
  0x9d   : > { %235 = vst [vmem:[%s172_s28 + $0x10] sm:$0xff] %v224_v15 }
  0xa0   : > { %v228_v16 = vpop.f32.mrf.mxu2 }
  0xa1   : > { %v229_v17 = vadd.f32 %v382_v11, %v228_v16  ;;  %v220_v18 = vpop.f32.mrf.mxu0  ;;  %v225_v19 = vpop.f32.mrf.mxu1 }
  0xa2   : > { %v221_v20 = vadd.f32 %v382_v11, %v220_v18  ;;  %v226_v21 = vadd.f32 %v382_v11, %v225_v19 }
  0xa3   : > { %237 = vst [vmem:[%s172_s28 + $0x20] sm:$0xff] %v229_v17 }
  0xa4   : > { %234 = vst [vmem:[%s172_s28 + $0x8] sm:$0xff] %v221_v20 }
  0xa5   : > { %236 = vst [vmem:[%s172_s28 + $0x18] sm:$0xff] %v226_v21 }
  0xa8   : > { %v230_v22 = vpop.f32.mrf.mxu2 }
  0xa9   : > { %v231_v23 = vadd.f32 %v382_v11, %v230_v22 }
  0xab   : > { %238 = vst [vmem:[%s172_s28 + $0x28] sm:$0xff] %v231_v23 }
  0xac   : > { %410 = shalt.err (!%p407_p3)
}
  0xad   : > { %s447_s24 = smov 128   ;;  %s448_s25 = smov 8  }
  0xae   : > { %341 = dma.vmem_to_hbm [thread:$0]  (%p507_p5), %s253_s30, 768, %s255_s7, %s240_s16, %s447_s24, %s447_s24, %s448_s25  }
  0xaf PF: > { %p347_p4 = scmp.ge.s32.totalorder %s445_s15, 2  ;;  %s269_s26 = sand.u32 1, %s433_s12  }
  0xb0   : > { %s270_s27 = scalar_lea.sflag [#allocation3], %s269_s26 }
  0xb1   : > { %p344_p7 = pnand %p347_p4, %p511_p6 }
  0xb3   : > { %p345_p8 = pneg %p344_p7 }
  0xb5   : > { %428 = dma.done.wait (%p345_p8), %s270_s27, 768  }
  0xb6   : > { %430 = vsyncadd (%p345_p8), %s270_s27, 4294966528  ;;  %p13_p9 = scmp.ge.s32.totalorder %s494_s18, 5   ;;  %s581_s12 = smov %s437_s13 }
  0xb7   : > { %s582_s13 = smov %s441_s14  ;;  %s583_s14 = smov %s505_s21 }
  0xb8   : > { %s584_s15 = smov %s494_s18  ;;  %15 = sbr.rel (!%p13_p9) target bundleno = 3 (0x3), region = 70 }
  0xbd   :  { %276 = vsyncpa [#allocation3], 1 }
  0xbe   :  { %278 = vsyncpa [#allocation3 + $0x1], 1 }

</bundles_post_ra>
